<compile_context>
chip_gen: v6e
topology: v6e:2x2x1
jax: 0.10.0
libtpu: 0.0.40
codegen_flags: <defaults>
</compile_context>

<pallas_src>
import functools

import jax
import jax.numpy as jnp
from jax.experimental import pallas as pl
from jax.experimental.pallas import tpu as pltpu

_PAD = 128  # MXU-/lane-aligned padded tile size (use 256 multiples at scale on v6e/v7x)


def gcn_kernel(adj_ref, feat_ref, w1_ref, b1_ref, w2_ref, b2_ref, out_ref,
               adj_pad, x_pad):
    """Fused 2-layer GCN forward on one TensorCore (gridless).

    adj_ref  : (N, N)      f32   raw adjacency
    feat_ref : (N, F)      f32   raw node features
    w1_ref   : (PAD, PAD)  bf16  padded gcn1 weight (F x H in top-left corner)
    b1_ref   : (1, PAD)    f32   padded gcn1 bias
    w2_ref   : (PAD, PAD)  bf16  padded gcn2 weight (H x C in top-left corner)
    b2_ref   : (1, PAD)    f32   padded gcn2 bias
    out_ref  : (N, C)      f32   output logits
    adj_pad  : (PAD, PAD)  f32   VMEM scratch (zero-padded adjacency)
    x_pad    : (PAD, PAD)  f32   VMEM scratch (zero-padded features)
    """
    n = adj_ref.shape[0]
    f = feat_ref.shape[1]
    c = out_ref.shape[1]

    # In-kernel zero padding (numerically exact, see module docstring).
    adj_pad[...] = jnp.zeros_like(adj_pad)
    x_pad[...] = jnp.zeros_like(x_pad)
    adj_pad[:n, :n] = adj_ref[...]
    x_pad[:n, :f] = feat_ref[...]

    adj = adj_pad[...].astype(jnp.bfloat16)      # entries 0/1/2 -> exact in bf16
    x = x_pad[...].astype(jnp.bfloat16)

    # --- Layer 1 (reassociated): adj @ (x @ W1) + b1, then ReLU ---
    p1 = jnp.dot(x, w1_ref[...], preferred_element_type=jnp.float32)           # (PAD, PAD) f32
    h = jnp.dot(adj, p1.astype(jnp.bfloat16), preferred_element_type=jnp.float32)
    h = jnp.maximum(h + b1_ref[...], 0.0)        # f32 epilogue (v5e-friendly)

    # --- Layer 2 (reassociated): adj @ (h @ W2) + b2 ---
    p2 = jnp.dot(h.astype(jnp.bfloat16), w2_ref[...],
                 preferred_element_type=jnp.float32)
    out = jnp.dot(adj, p2.astype(jnp.bfloat16), preferred_element_type=jnp.float32)
    out = out + b2_ref[...]

    # Store only the real (N, C) block; tiny masked store is negligible here.
    out_ref[...] = out[:n, :c].astype(out_ref.dtype)


@functools.partial(jax.jit, static_argnames=("num_classes",))
def gcn_forward(adj, features, w1_p, b1_p, w2_p, b2_p, *, num_classes):
    n = adj.shape[0]
    c = num_classes

    flops = 2 * 4 * _PAD * _PAD * _PAD                      # 4 padded 128^3 MXU matmuls
    bytes_accessed = (adj.size * 4 + features.size * 4      # raw f32 inputs
                      + (w1_p.size + w2_p.size) * 2         # bf16 padded weights
                      + (b1_p.size + b2_p.size) * 4         # f32 padded biases
                      + n * c * 4)                          # f32 output

    vmem = pl.BlockSpec(memory_space=pltpu.MemorySpace.VMEM)
    return pl.pallas_call(
        gcn_kernel,
        out_shape=jax.ShapeDtypeStruct((n, c), jnp.float32),
        in_specs=[vmem] * 6,
        out_specs=vmem,
        scratch_shapes=[pltpu.VMEM((_PAD, _PAD), jnp.float32),
                        pltpu.VMEM((_PAD, _PAD), jnp.float32)],
        cost_estimate=pl.CostEstimate(flops=flops, transcendentals=0,
                                      bytes_accessed=bytes_accessed),
    )(adj, features, w1_p, b1_p, w2_p, b2_p)


def init_linear_params(key, in_features, out_features):
    """Deterministic init matching torch.nn.Linear default:
    U(-1/sqrt(in_features), 1/sqrt(in_features)) for weight and bias.
    Weight stored transposed: (in_features, out_features)."""
    kw, kb = jax.random.split(key)
    bound = 1.0 / jnp.sqrt(jnp.float32(in_features))
    w = jax.random.uniform(kw, (in_features, out_features), jnp.float32,
                           minval=-bound, maxval=bound)
    b = jax.random.uniform(kb, (1, out_features), jnp.float32,
                           minval=-bound, maxval=bound)
    return w, b


def pad_params(w1, b1, w2, b2):
    """One-time (setup-time) padding / casting of the static parameters."""
    def pad2d(a, rows, cols):
        return jnp.pad(a, ((0, rows - a.shape[0]), (0, cols - a.shape[1])))
    w1_p = pad2d(w1, _PAD, _PAD).astype(jnp.bfloat16)
    w2_p = pad2d(w2, _PAD, _PAD).astype(jnp.bfloat16)
    b1_p = pad2d(b1, 1, _PAD)          # biases stay f32 (post-accumulation add)
    b2_p = pad2d(b2, 1, _PAD)
    return w1_p, b1_p, w2_p, b2_p


if __name__ == "__main__":
    # Module defaults: input_size=34, hidden_size=5, output classes=2.
    # Karate-club-like setting: N = 34 nodes, feature dim = 34.
    N, INPUT_SIZE, HIDDEN_SIZE, NUM_CLASSES = 34, 34, 5, 2

    key = jax.random.PRNGKey(0)
    k_adj, k_feat, k_l1, k_l2 = jax.random.split(key, 4)

    # Deterministic synthetic inputs.
    adj_raw = (jax.random.uniform(k_adj, (N, N)) > 0.7).astype(jnp.float32)
    adj = jnp.maximum(adj_raw, adj_raw.T)                     # symmetric adjacency
    adj = adj + jnp.eye(N, dtype=jnp.float32)                 # self loops
    features = jax.random.normal(k_feat, (N, INPUT_SIZE), jnp.float32)

    # Deterministic parameters (shapes from GCN.__init__), padded ONCE.
    w1, b1 = init_linear_params(k_l1, INPUT_SIZE, HIDDEN_SIZE)
    w2, b2 = init_linear_params(k_l2, HIDDEN_SIZE, NUM_CLASSES)
    w1_p, b1_p, w2_p, b2_p = jax.block_until_ready(pad_params(w1, b1, w2, b2))

    out = gcn_forward(adj, features, w1_p, b1_p, w2_p, b2_p,
                      num_classes=NUM_CLASSES)
    out = jax.block_until_ready(out)
    assert out.shape == (N, NUM_CLASSES)

    # Reference 1: the exact math the kernel implements (bf16 MXU inputs,
    # f32 accumulation, reassociated matmuls) in plain JAX.
    adj_bf, x_bf = adj.astype(jnp.bfloat16), features.astype(jnp.bfloat16)
    w1_bf, w2_bf = w1.astype(jnp.bfloat16), w2.astype(jnp.bfloat16)
    p1 = jnp.dot(x_bf, w1_bf, preferred_element_type=jnp.float32)
    h_ref = jnp.maximum(jnp.dot(adj_bf, p1.astype(jnp.bfloat16),
                                preferred_element_type=jnp.float32) + b1, 0.0)
    p2 = jnp.dot(h_ref.astype(jnp.bfloat16), w2_bf,
                 preferred_element_type=jnp.float32)
    ref_kernel_math = jnp.dot(adj_bf, p2.astype(jnp.bfloat16),
                              preferred_element_type=jnp.float32) + b2
    assert jnp.allclose(out, ref_kernel_math, atol=1e-1, rtol=2e-2)

    # Reference 2: original module semantics in pure f32; bf16 MXU inputs bound
    # the deviation to well under 5% of the output scale.
    h_f32 = jnp.maximum(adj @ features @ w1 + b1, 0.0)
    ref_f32 = adj @ h_f32 @ w2 + b2
    rel_err = jnp.max(jnp.abs(out - ref_f32)) / jnp.max(jnp.abs(ref_f32))
    assert rel_err < 5e-2, float(rel_err)

    print("KERNEL_OK")
</pallas_src>

<mosaic_0001>
module attributes {stable_mosaic.version = 11 : i64} {
  func.func @gcn_kernel(%arg0: memref<34x34xf32, #tpu.memory_space<vmem>>, %arg1: memref<34x34xf32, #tpu.memory_space<vmem>>, %arg2: memref<128x128xbf16, #tpu.memory_space<vmem>>, %arg3: memref<1x128xf32, #tpu.memory_space<vmem>>, %arg4: memref<128x128xbf16, #tpu.memory_space<vmem>>, %arg5: memref<1x128xf32, #tpu.memory_space<vmem>>, %arg6: memref<34x2xf32, #tpu.memory_space<vmem>>, %arg7: memref<128x128xf32, #tpu.memory_space<vmem>>, %arg8: memref<128x128xf32, #tpu.memory_space<vmem>>) attributes {dimension_semantics = [], scalar_prefetch = 0 : i64, scratch_operands = 2 : i64, tpu.core_type = #tpu.core_type<tc>} {
    %cst = arith.constant 0.000000e+00 : f32
    %0 = vector.broadcast %cst : f32 to vector<128x128xf32>
    %c0 = arith.constant 0 : index
    %c0_0 = arith.constant 0 : index
    %1 = vector.load %arg7[%c0, %c0_0] : memref<128x128xf32, #tpu.memory_space<vmem>>, vector<128x128xf32>
    tpu.vector_store %arg7[%c0, %c0_0], %0 {strides = array<i32>} : memref<128x128xf32, #tpu.memory_space<vmem>>, vector<128x128xf32>,
    %cst_1 = arith.constant 0.000000e+00 : f32
    %2 = vector.broadcast %cst_1 : f32 to vector<128x128xf32>
    %c0_2 = arith.constant 0 : index
    %c0_3 = arith.constant 0 : index
    %3 = vector.load %arg8[%c0_2, %c0_3] : memref<128x128xf32, #tpu.memory_space<vmem>>, vector<128x128xf32>
    tpu.vector_store %arg8[%c0_2, %c0_3], %2 {strides = array<i32>} : memref<128x128xf32, #tpu.memory_space<vmem>>, vector<128x128xf32>,
    %c0_4 = arith.constant 0 : index
    %c0_5 = arith.constant 0 : index
    %4 = vector.load %arg0[%c0_4, %c0_5] : memref<34x34xf32, #tpu.memory_space<vmem>>, vector<34x34xf32>
    %c0_6 = arith.constant 0 : index
    %c0_7 = arith.constant 0 : index
    %5 = vector.load %arg7[%c0_6, %c0_7] : memref<128x128xf32, #tpu.memory_space<vmem>>, vector<34x34xf32>
    tpu.vector_store %arg7[%c0_6, %c0_7], %4 {strides = array<i32>} : memref<128x128xf32, #tpu.memory_space<vmem>>, vector<34x34xf32>,
    %c0_8 = arith.constant 0 : index
    %c0_9 = arith.constant 0 : index
    %6 = vector.load %arg1[%c0_8, %c0_9] : memref<34x34xf32, #tpu.memory_space<vmem>>, vector<34x34xf32>
    %c0_10 = arith.constant 0 : index
    %c0_11 = arith.constant 0 : index
    %7 = vector.load %arg8[%c0_10, %c0_11] : memref<128x128xf32, #tpu.memory_space<vmem>>, vector<34x34xf32>
    tpu.vector_store %arg8[%c0_10, %c0_11], %6 {strides = array<i32>} : memref<128x128xf32, #tpu.memory_space<vmem>>, vector<34x34xf32>,
    %c0_12 = arith.constant 0 : index
    %c0_13 = arith.constant 0 : index
    %8 = vector.load %arg7[%c0_12, %c0_13] : memref<128x128xf32, #tpu.memory_space<vmem>>, vector<128x128xf32>
    %9 = arith.truncf %8 : vector<128x128xf32> to vector<128x128xbf16>
    %c0_14 = arith.constant 0 : index
    %c0_15 = arith.constant 0 : index
    %10 = vector.load %arg8[%c0_14, %c0_15] : memref<128x128xf32, #tpu.memory_space<vmem>>, vector<128x128xf32>
    %11 = arith.truncf %10 : vector<128x128xf32> to vector<128x128xbf16>
    %c0_16 = arith.constant 0 : index
    %c0_17 = arith.constant 0 : index
    %12 = vector.load %arg2[%c0_16, %c0_17] : memref<128x128xbf16, #tpu.memory_space<vmem>>, vector<128x128xbf16>
    %cst_18 = arith.constant dense<0.000000e+00> : vector<128x128xf32>
    %13 = tpu.matmul %11, %12, %cst_18 {dimension_numbers = #tpu.dot_dimension_numbers<[1], [0], [0], [1], [0, 0, 1, 1], [], []>} : vector<128x128xbf16>, vector<128x128xbf16>, vector<128x128xf32> -> vector<128x128xf32>
    %14 = arith.truncf %13 : vector<128x128xf32> to vector<128x128xbf16>
    %cst_19 = arith.constant dense<0.000000e+00> : vector<128x128xf32>
    %15 = tpu.matmul %9, %14, %cst_19 {dimension_numbers = #tpu.dot_dimension_numbers<[1], [0], [0], [1], [0, 0, 1, 1], [], []>} : vector<128x128xbf16>, vector<128x128xbf16>, vector<128x128xf32> -> vector<128x128xf32>
    %c0_20 = arith.constant 0 : index
    %c0_21 = arith.constant 0 : index
    %16 = vector.load %arg3[%c0_20, %c0_21] : memref<1x128xf32, #tpu.memory_space<vmem>>, vector<1x128xf32>
    %17 = vector.broadcast %16 : vector<1x128xf32> to vector<128x128xf32>
    %18 = arith.addf %15, %17 : vector<128x128xf32>
    %cst_22 = arith.constant 0.000000e+00 : f32
    %19 = vector.broadcast %cst_22 : f32 to vector<128x128xf32>
    %20 = arith.maximumf %18, %19 : vector<128x128xf32>
    %21 = arith.truncf %20 : vector<128x128xf32> to vector<128x128xbf16>
    %c0_23 = arith.constant 0 : index
    %c0_24 = arith.constant 0 : index
    %22 = vector.load %arg4[%c0_23, %c0_24] : memref<128x128xbf16, #tpu.memory_space<vmem>>, vector<128x128xbf16>
    %cst_25 = arith.constant dense<0.000000e+00> : vector<128x128xf32>
    %23 = tpu.matmul %21, %22, %cst_25 {dimension_numbers = #tpu.dot_dimension_numbers<[1], [0], [0], [1], [0, 0, 1, 1], [], []>} : vector<128x128xbf16>, vector<128x128xbf16>, vector<128x128xf32> -> vector<128x128xf32>
    %24 = arith.truncf %23 : vector<128x128xf32> to vector<128x128xbf16>
    %cst_26 = arith.constant dense<0.000000e+00> : vector<128x128xf32>
    %25 = tpu.matmul %9, %24, %cst_26 {dimension_numbers = #tpu.dot_dimension_numbers<[1], [0], [0], [1], [0, 0, 1, 1], [], []>} : vector<128x128xbf16>, vector<128x128xbf16>, vector<128x128xf32> -> vector<128x128xf32>
    %c0_27 = arith.constant 0 : index
    %c0_28 = arith.constant 0 : index
    %26 = vector.load %arg5[%c0_27, %c0_28] : memref<1x128xf32, #tpu.memory_space<vmem>>, vector<1x128xf32>
    %27 = vector.broadcast %26 : vector<1x128xf32> to vector<128x128xf32>
    %28 = arith.addf %25, %27 : vector<128x128xf32>
    %29 = vector.extract_strided_slice %28 {offsets = [0, 0], sizes = [34, 2], strides = [1, 1]} : vector<128x128xf32> to vector<34x2xf32>
    %c0_29 = arith.constant 0 : index
    %c0_30 = arith.constant 0 : index
    %30 = vector.load %arg6[%c0_29, %c0_30] : memref<34x2xf32, #tpu.memory_space<vmem>>, vector<34x2xf32>
    tpu.vector_store %arg6[%c0_29, %c0_30], %29 {strides = array<i32>} : memref<34x2xf32, #tpu.memory_space<vmem>>, vector<34x2xf32>,
    return
  }
}

</mosaic_0001>

<bundles_post_ra>
// kernel: gcn_forward.1
= control target key start
LH: loop header
LB: loop body
LE: loop exit
PB: predicated region body
PF: predicated region fallthrough
CT: control target
= control target key end

     0   :  { %11 = vsyncpa [#allocation5], 0  ;;  %s1202_s0 = inlined_call_operand.hbm [shape: f32[34,34], index: 0, kind: input, shape index: {}]   ;;  %s1203_s1 = inlined_call_operand.hbm [shape: f32[34,34], index: 1, kind: input, shape index: {}]   ;;  %s1204_s2 = inlined_call_operand.hbm [shape: bf16[128,128], index: 2, kind: input, shape index: {}]   ;;  %s1205_s3 = inlined_call_operand.vmem [shape: f32[1,128], index: 3, kind: input, shape index: {}]   ;;  %s1206_s4 = inlined_call_operand.hbm [shape: bf16[128,128], index: 4, kind: input, shape index: {}]   ;;  %s1207_s5 = inlined_call_operand.vmem [shape: f32[1,128], index: 5, kind: input, shape index: {}]   ;;  %s1208_s6 = inlined_call_operand.vmem [shape: f32[34,2], index: 6, kind: output, shape index: {}]  }
   0x1   :  { %12 = vsyncpa [#allocation7], 0 }
   0x2   :  { %13 = vsyncpa [#allocation10], 0  ;;  %s1075_s21 = smov [#allocation6]   ;;  %s1076_s23 = smov [#allocation4]  }
   0x3   :  { %s31_s22 = sshll.u32 %s1075_s21, 4  ;;  %s19_s24 = sshll.u32 %s1076_s23, 4  ;;  %s32_s22 = int_to_ptr.vmem [resolvable:$true] %s31_s22  ;;  %s20_s24 = int_to_ptr.vmem [resolvable:$true] %s19_s24 }
   0x4   :  { %s997_s25 = scalar_lea.vmem %s32_s22, 640  ;;  %p1002_p1 = scmp.lt.s32.totalorder %s32_s22, %s32_s22 }
   0x5   :  { %p998_p0 = scmp.ne.s32.totalorder %s32_s22, %s997_s25  ;;  %p1003_p2 = scmp.lt.s32.totalorder %s997_s25, %s997_s25 }
   0x7   :  { %p1004_p3 = por %p1003_p2, %p1002_p1 }
   0x9   :  { %p1005_p4 = pnand %p1004_p3, %p998_p0 }
   0xb   :  { %1008 = shalt.err (!%p1005_p4)
}
   0xc   :  { %s1077_s26 = smov 128   ;;  %s1078_s27 = smov 8  }
   0xd   :  { %37 = dma.hbm_to_vmem [thread:$0]  %s1203_s1, 640, %s32_s22, [#allocation7], %s1077_s26, %s1077_s26, %s1078_s27  }
   0xe   :  { %s1017_s30 = scalar_lea.vmem %s20_s24, 640  ;;  %p1022_p6 = scmp.lt.s32.totalorder %s20_s24, %s20_s24 }
   0xf   :  { %p1018_p5 = scmp.ne.s32.totalorder %s20_s24, %s1017_s30  ;;  %p1023_p7 = scmp.lt.s32.totalorder %s1017_s30, %s1017_s30 }
  0x11   :  { %p1024_p8 = por %p1023_p7, %p1022_p6 }
  0x13   :  { %p1025_p9 = pnand %p1024_p8, %p1018_p5 }
  0x15   :  { %1028 = shalt.err (!%p1025_p9)
}
  0x16   :  { %25 = dma.hbm_to_vmem [thread:$0]  %s1202_s0, 640, %s20_s24, [#allocation5], %s1077_s26, %s1077_s26, %s1078_s27  }
  0x17   :  { %s1079_s9 = smov [#allocation8]  }
  0x18   :  { %s43_s10 = sshll.u32 %s1079_s9, 4  ;;  %s44_s10 = int_to_ptr.vmem [resolvable:$true] %s43_s10 }
  0x19   :  { %s1037_s11 = scalar_lea.vmem %s44_s10, 1024  ;;  %p1042_p11 = scmp.lt.s32.totalorder %s44_s10, %s44_s10 }
  0x1a   :  { %p1038_p10 = scmp.ne.s32.totalorder %s44_s10, %s1037_s11  ;;  %p1043_p12 = scmp.lt.s32.totalorder %s1037_s11, %s1037_s11 }
  0x1c   :  { %p1044_p13 = por %p1043_p12, %p1042_p11 }
  0x1e   :  { %p1045_p0 = pnand %p1044_p13, %p1038_p10 }
  0x20   :  { %1048 = shalt.err (!%p1045_p0)
}
  0x21   :  { %s1080_s1 = smov 64   ;;  %s1081_s12 = smov 4  }
  0x22   :  { %49 = dma.hbm_to_vmem [thread:$0]  %s1204_s2, 1024, %s44_s10, [#allocation7], %s1080_s1, %s1080_s1, %s1081_s12  }
  0x23   :  { %s1082_s15 = smov [#allocation9]  }
  0x24   :  { %s57_s16 = sshll.u32 %s1082_s15, 4  ;;  %s58_s16 = int_to_ptr.vmem [resolvable:$true] %s57_s16 }
  0x25   :  { %s1057_s0 = scalar_lea.vmem %s58_s16, 1024  ;;  %p1062_p2 = scmp.lt.s32.totalorder %s58_s16, %s58_s16 }
  0x26   :  { %p1058_p1 = scmp.ne.s32.totalorder %s58_s16, %s1057_s0  ;;  %p1063_p3 = scmp.lt.s32.totalorder %s1057_s0, %s1057_s0 }
  0x28   :  { %p1064_p4 = por %p1063_p3, %p1062_p2 }
  0x2a   :  { %p1065_p5 = pnand %p1064_p4, %p1058_p1 }
  0x2c   :  { %1068 = shalt.err (!%p1065_p5)
}
  0x2d   :  { %63 = dma.hbm_to_vmem [thread:$0]  %s1206_s4, 1024, %s58_s16, [#allocation10], %s1080_s1, %s1080_s1, %s1081_s12  }
  0x2e   :  { %1069 = dma.done.wait [#allocation5], 640  }
  0x2f   :  { %1070 = vsyncadd [#allocation5], 4294966656 }
  0x30   :  { %1071 = dma.done.wait [#allocation7], 1664  }
  0x31   :  { %1072 = vsyncadd [#allocation7], 4294965632 }
  0x32   :  { %1073 = dma.done.wait [#allocation10], 1024  }
  0x33   :  { %1074 = vsyncadd [#allocation10], 4294966272  ;;  %v1083_v0 = vmov 0.0   ;;  %v973_v1 = vld [vmem:[#allocation8 + $0x38] sm:$0xff]   ;;  %v974_v2 = vld [vmem:[#allocation8 + $0x30] sm:$0xff]   ;;  %vm116_vm0 = vcmask 277504  }
  0x34   :  { %95 = vst [vmem:[#allocation3] sm:$0xff] %v1083_v0  ;;  %96 = vst [vmem:[#allocation3 + $0x8] sm:$0xff] %v1083_v0  ;;  %836 = vmatprep.subr.bf16.mxu0 %v973_v1  ;;  %v975_v3 = vld [vmem:[#allocation8 + $0x28] sm:$0xff]   ;;  %v976_v4 = vld [vmem:[#allocation8 + $0x20] sm:$0xff]   ;;  %vm121_vm1 = vcmask 271360   ;;  %v1084_v22 = vmov 0.0|0.0  }
  0x35   :  { %79 = vst [vmem:[#allocation2] sm:$0xff] %v1083_v0  ;;  %80 = vst [vmem:[#allocation2 + $0x8] sm:$0xff] %v1083_v0  ;;  %837 = vmatpush3.bf16.msra.mxu0 %v973_v1  ;;  %v123_v5 = vld [vmem:[#allocation6] sm:$0xff]  ;;  %v124_v6 = vld [vmem:[#allocation6 + $0x8] sm:$0xff]  ;;  %vm740_vm2 = vcmask 15360   ;;  %vm745_vm3 = vcmask 9216  }
  0x36   :  { %81 = vst [vmem:[#allocation2 + $0x10] sm:$0xff] %v1083_v0  ;;  %82 = vst [vmem:[#allocation2 + $0x18] sm:$0xff] %v1083_v0  ;;  %838 = vmatprep.subr.bf16.mxu0 %v974_v2  ;;  %v125_v7 = vld [vmem:[#allocation6 + $0x10] sm:$0xff]  ;;  %v126_v8 = vld [vmem:[#allocation6 + $0x18] sm:$0xff] }
  0x37   :  { %83 = vst [vmem:[#allocation2 + $0x20] sm:$0xff] %v1083_v0  ;;  %97 = vst [vmem:[#allocation3 + $0x10] sm:$0xff] %v1083_v0  ;;  %v127_v9 = vld [vmem:[#allocation6 + $0x20] sm:$0x3]  ;;  %v978_v11 = vld [vmem:[#allocation8 + $0x10] sm:$0xff]  }
  0x38   :  { %98 = vst [vmem:[#allocation3 + $0x18] sm:$0xff] %v1083_v0  ;;  %99 = vst [vmem:[#allocation3 + $0x20] sm:$0xff] %v1083_v0  ;;  %v977_v10 = vld [vmem:[#allocation8 + $0x18] sm:$0xff]   ;;  %v979_v15 = vld [vmem:[#allocation8 + $0x8] sm:$0xff]  }
  0x39   :  { %839 = vmatpush3.bf16.msra.mxu0 %v974_v2  ;;  %128 = vst.msk [vmem:[#allocation3] sm:$0xff] %vm116_vm0, %v123_v5  ;;  %129 = vst.msk [vmem:[#allocation3 + $0x8] sm:$0xff] %vm116_vm0, %v124_v6  ;;  %v980_v16 = vld [vmem:[#allocation8] sm:$0xff]   ;;  %v111_v23 = vld [vmem:[#allocation4] sm:$0xff] }
  0x3a   :  { %840 = vmatprep.subr.bf16.mxu0 %v975_v3  ;;  %130 = vst.msk [vmem:[#allocation3 + $0x10] sm:$0xff] %vm116_vm0, %v125_v7  ;;  %131 = vst.msk [vmem:[#allocation3 + $0x18] sm:$0xff] %vm116_vm0, %v126_v8  ;;  %v112_v24 = vld [vmem:[#allocation4 + $0x8] sm:$0xff]  ;;  %v113_v25 = vld [vmem:[#allocation4 + $0x10] sm:$0xff] }
  0x3b   :  { %132 = vst.msk [vmem:[#allocation3 + $0x20] sm:$0x3] %vm121_vm1, %v127_v9  ;;  %v114_v26 = vld [vmem:[#allocation4 + $0x18] sm:$0xff]  ;;  %v115_v29 = vld [vmem:[#allocation4 + $0x20] sm:$0x3]  ;;  %v981_v31 = vld [vmem:[#allocation9 + $0x38] sm:$0xff]  }
  0x3c   :  { %117 = vst.msk [vmem:[#allocation2] sm:$0xff] %vm116_vm0, %v111_v23  ;;  %118 = vst.msk [vmem:[#allocation2 + $0x8] sm:$0xff] %vm116_vm0, %v112_v24  ;;  %v982_v32 = vld [vmem:[#allocation9 + $0x30] sm:$0xff]   ;;  %v983_v33 = vld [vmem:[#allocation9 + $0x28] sm:$0xff]  }
  0x3d   :  { %841 = vmatpush3.bf16.msra.mxu0 %v975_v3  ;;  %119 = vst.msk [vmem:[#allocation2 + $0x10] sm:$0xff] %vm116_vm0, %v113_v25  ;;  %120 = vst.msk [vmem:[#allocation2 + $0x18] sm:$0xff] %vm116_vm0, %v114_v26  ;;  %v984_v34 = vld [vmem:[#allocation9 + $0x20] sm:$0xff]   ;;  %v985_v35 = vld [vmem:[#allocation9 + $0x18] sm:$0xff]  }
  0x3e   :  { %842 = vmatprep.subr.bf16.mxu0 %v976_v4  ;;  %122 = vst.msk [vmem:[#allocation2 + $0x20] sm:$0x3] %vm121_vm1, %v115_v29  ;;  %v986_v2 = vld [vmem:[#allocation9 + $0x10] sm:$0xff]   ;;  %v988_v3 = vld [vmem:[#allocation9] sm:$0xff]  }
  0x3f   :  { %v762_v6 = vld [vmem:[%s1205_s3] ss:$0 sm:$0xff] }
  0x40   :  { %v157_v12 = vld [vmem:[#allocation3] sm:$0xff]  ;;  %v158_v13 = vld [vmem:[#allocation3 + $0x8] sm:$0xff] }
  0x41   :  { %843 = vmatpush3.bf16.msra.mxu0 %v976_v4  ;;  %v173_v14 = vpack.c.bf16 %v158_v13, %v157_v12  ;;  %v159_v17 = vld [vmem:[#allocation3 + $0x10] sm:$0xff]  ;;  %v160_v18 = vld [vmem:[#allocation3 + $0x18] sm:$0xff] }
  0x42   :  { %844 = vmatprep.subr.bf16.mxu0 %v977_v10  ;;  %v161_v19 = vld [vmem:[#allocation3 + $0x20] sm:$0xff]  ;;  %v174_v20 = vpack.c.bf16 %v160_v18, %v159_v17 }
  0x43   :  { %852 = vmatprep.mubr.bf16.mxu0 %v173_v14  ;;  %v175_v21 = vpack.c.bf16 %v1083_v0, %v161_v19  ;;  %v133_v27 = vld [vmem:[#allocation2] sm:$0xff]  ;;  %v134_v28 = vld [vmem:[#allocation2 + $0x8] sm:$0xff] }
  0x44   :  { %v1157_v30 = vpack.c.bf16 %v134_v28, %v133_v27  ;;  %v135_v60 = vld [vmem:[#allocation2 + $0x10] sm:$0xff]  ;;  %v136_v61 = vld [vmem:[#allocation2 + $0x18] sm:$0xff] }
  0x45   :  { %845 = vmatpush3.bf16.msra.mxu0 %v977_v10  ;;  %v137_v62 = vld [vmem:[#allocation2 + $0x20] sm:$0xff]  ;;  %v1161_v63 = vpack.c.bf16 %v136_v61, %v135_v60 }
  0x46   :  { %846 = vmatprep.subr.bf16.mxu0 %v978_v11  ;;  %884 = vmatprep.mubr.bf16.mxu1 %v1157_v30  ;;  %v1164_v1 = vpack.c.bf16 %v1083_v0, %v137_v62  ;;  %v987_v0 = vld [vmem:[#allocation9 + $0x8] sm:$0xff]  }
  0x49   :  { %847 = vmatpush3.bf16.msra.mxu0 %v978_v11 }
  0x4a   :  { %848 = vmatprep.subr.bf16.mxu0 %v979_v15 }
  0x4d   :  { %849 = vmatpush3.bf16.msra.mxu0 %v979_v15 }
  0x4e   :  { %850 = vmatprep.subr.bf16.mxu0 %v980_v16 }
  0x51   :  { %851 = vmatpush3.bf16.msra.mxu0 %v980_v16 }
  0x52   :  { %900 = vmatprep.subr.bf16.mxu0 %v981_v31 }
  0x54   :  { %853 = vmatmul.mubr.bf16.vlgmr.msra.gmra.mxu0 %v174_v20 }
  0x55   :  { %856 = vmatprep.mubr.bf16.mxu0 %v175_v21  ;;  %901 = vmatpush3.bf16.msra.mxu0 %v981_v31 }
  0x56   :  { %902 = vmatprep.subr.bf16.mxu0 %v982_v32 }
  0x59   :  { %903 = vmatpush3.bf16.msra.mxu0 %v982_v32 }
  0x5a   :  { %904 = vmatprep.subr.bf16.mxu0 %v983_v33 }
  0x5c   :  { %857 = vmatmul.mubr.bf16.gmra.mxu0 %v1084_v22 }
  0x5d   :  { %860 = vmatprep.mubr.bf16.mxu0 %v1084_v22  ;;  %905 = vmatpush3.bf16.msra.mxu0 %v983_v33 }
  0x5e   :  { %906 = vmatprep.subr.bf16.mxu0 %v984_v34 }
  0x61   :  { %907 = vmatpush3.bf16.msra.mxu0 %v984_v34 }
  0x62   :  { %908 = vmatprep.subr.bf16.mxu0 %v985_v35 }
  0x64   :  { %861 = vmatmul.mubr.bf16.gmra.mxu0 %v1084_v22 }
  0x65   :  { %864 = vmatprep.mubr.bf16.mxu0 %v1084_v22  ;;  %909 = vmatpush3.bf16.msra.mxu0 %v985_v35 }
  0x66   :  { %910 = vmatprep.subr.bf16.mxu0 %v986_v2 }
  0x69   :  { %911 = vmatpush3.bf16.msra.mxu0 %v986_v2 }
  0x6a   :  { %912 = vmatprep.subr.bf16.mxu0 %v987_v0 }
  0x6c   :  { %865 = vmatmul.mubr.bf16.gmra.mxu0 %v1084_v22 }
  0x6d   :  { %913 = vmatpush3.bf16.msra.mxu0 %v987_v0 }
  0x6e   :  { %914 = vmatprep.subr.bf16.mxu0 %v988_v3 }
  0x71   :  { %915 = vmatpush3.bf16.msra.mxu0 %v988_v3 }
 0x114   :  { %v854_v36 = vpop.f32.mrf.mxu0 }
 0x116   :  { %v279_v37 = vpop.f32.mrf.mxu0 }
 0x118   :  { %v855_v38 = vpop.f32.mrf.mxu0 }
 0x119   :  { %v343_v58 = vpack.c.bf16 %v855_v38, %v854_v36 }
 0x11a   :  { %v282_v39 = vpop.f32.mrf.mxu0 }
 0x11b   :  { %v342_v59 = vpack.c.bf16 %v282_v39, %v279_v37 }
 0x11c   :  { %v858_v40 = vpop.f32.mrf.mxu0 }
 0x11e   :  { %v295_v41 = vpop.f32.mrf.mxu0 }
 0x120   :  { %v859_v42 = vpop.f32.mrf.mxu0 }
 0x121   :  { %v345_v56 = vpack.c.bf16 %v859_v42, %v858_v40 }
 0x122   :  { %v298_v43 = vpop.f32.mrf.mxu0 }
 0x123   :  { %v344_v57 = vpack.c.bf16 %v298_v43, %v295_v41 }
 0x124   :  { %v862_v44 = vpop.f32.mrf.mxu0 }
 0x126   :  { %v311_v45 = vpop.f32.mrf.mxu0 }
 0x128   :  { %v863_v46 = vpop.f32.mrf.mxu0 }
 0x129   :  { %v347_v54 = vpack.c.bf16 %v863_v46, %v862_v44 }
 0x12a   :  { %v314_v47 = vpop.f32.mrf.mxu0 }
 0x12b   :  { %v346_v55 = vpack.c.bf16 %v314_v47, %v311_v45 }
 0x12c   :  { %v866_v48 = vpop.f32.mrf.mxu0 }
 0x12e   :  { %v327_v49 = vpop.f32.mrf.mxu0 }
 0x130   :  { %v867_v50 = vpop.f32.mrf.mxu0 }
 0x131   :  { %v349_v51 = vpack.c.bf16 %v867_v50, %v866_v48 }
 0x132   :  { %v330_v52 = vpop.f32.mrf.mxu0 }
 0x133   :  { %v348_v53 = vpack.c.bf16 %v330_v52, %v327_v49  ;;  %868 = vmatprep.subr.bf16.mxu1 %v349_v51 }
 0x134   :  { %869 = vmatpush3.bf16.msra.mxu1 %v349_v51 }
 0x135   :  { %870 = vmatprep.subr.bf16.mxu1 %v348_v53 }
 0x138   :  { %871 = vmatpush3.bf16.msra.mxu1 %v348_v53 }
 0x139   :  { %872 = vmatprep.subr.bf16.mxu1 %v347_v54 }
 0x13c   :  { %873 = vmatpush3.bf16.msra.mxu1 %v347_v54 }
 0x13d   :  { %874 = vmatprep.subr.bf16.mxu1 %v346_v55 }
 0x140   :  { %875 = vmatpush3.bf16.msra.mxu1 %v346_v55 }
 0x141   :  { %876 = vmatprep.subr.bf16.mxu1 %v345_v56 }
 0x144   :  { %877 = vmatpush3.bf16.msra.mxu1 %v345_v56 }
 0x145   :  { %878 = vmatprep.subr.bf16.mxu1 %v344_v57 }
 0x148   :  { %879 = vmatpush3.bf16.msra.mxu1 %v344_v57 }
 0x149   :  { %880 = vmatprep.subr.bf16.mxu1 %v343_v58 }
 0x14c   :  { %881 = vmatpush3.bf16.msra.mxu1 %v343_v58 }
 0x14d   :  { %882 = vmatprep.subr.bf16.mxu1 %v342_v59 }
 0x150   :  { %883 = vmatpush3.bf16.msra.mxu1 %v342_v59 }
 0x153   :  { %885 = vmatmul.mubr.bf16.vlgmr.msra.gmra.mxu1 %v1161_v63 }
 0x154   :  { %888 = vmatprep.mubr.bf16.mxu1 %v1164_v1 }
 0x15b   :  { %889 = vmatmul.mubr.bf16.gmra.mxu1 %v1084_v22 }
 0x15c   :  { %892 = vmatprep.mubr.bf16.mxu1 %v1084_v22 }
 0x163   :  { %893 = vmatmul.mubr.bf16.gmra.mxu1 %v1084_v22 }
 0x164   :  { %896 = vmatprep.mubr.bf16.mxu1 %v1084_v22 }
 0x16b   :  { %897 = vmatmul.mubr.bf16.gmra.mxu1 %v1084_v22 }
 0x16c   :  { %948 = vmatprep.mubr.bf16.mxu1 %v1157_v30 }
 0x213   :  { %v886_v4 = vpop.f32.mrf.mxu1 }
 0x214   :  { %v400_v10 = vadd.f32 %v886_v4, %v762_v6 }
 0x215   :  { %v391_v5 = vpop.f32.mrf.mxu1 }
 0x216   :  { %v392_v8 = vadd.f32 %v762_v6, %v391_v5  ;;  %v456_v17 = vmax.f32 %v400_v10, 0.0 }
 0x217   :  { %v887_v7 = vpop.f32.mrf.mxu1 }
 0x218   :  { %v403_v9 = vadd.f32 %v887_v7, %v762_v6  ;;  %v454_v15 = vmax.f32 %v392_v8, 0.0 }
 0x219   :  { %v394_v11 = vpop.f32.mrf.mxu1 }
 0x21a   :  { %v395_v12 = vadd.f32 %v762_v6, %v394_v11  ;;  %v457_v13 = vmax.f32 %v403_v9, 0.0 }
 0x21b   :  { %v890_v14 = vpop.f32.mrf.mxu1 }
 0x21c   :  { %v455_v16 = vmax.f32 %v395_v12, 0.0  ;;  %v471_v20 = vpack.c.bf16 %v457_v13, %v456_v17  ;;  %v416_v25 = vadd.f32 %v890_v14, %v762_v6 }
 0x21d   :  { %v407_v18 = vpop.f32.mrf.mxu1 }
 0x21e   :  { %v470_v19 = vpack.c.bf16 %v455_v16, %v454_v15  ;;  %v408_v23 = vadd.f32 %v762_v6, %v407_v18  ;;  %v460_v32 = vmax.f32 %v416_v25, 0.0  ;;  %v771_v25 = vld [vmem:[%s1207_s5] ss:$0 sm:$0xff] }
 0x21f   :  { %v891_v21 = vpop.f32.mrf.mxu1 }
 0x220   :  { %v419_v24 = vadd.f32 %v891_v21, %v762_v6  ;;  %916 = vmatprep.mubr.bf16.mxu0 %v470_v19  ;;  %v458_v30 = vmax.f32 %v408_v23, 0.0 }
 0x221   :  { %v410_v26 = vpop.f32.mrf.mxu1  ;;  %917 = vmatmul.mubr.bf16.vlgmr.msra.gmra.mxu0 %v471_v20 }
 0x222   :  { %v411_v27 = vadd.f32 %v762_v6, %v410_v26  ;;  %v461_v28 = vmax.f32 %v419_v24, 0.0 }
 0x223   :  { %v894_v29 = vpop.f32.mrf.mxu1 }
 0x224   :  { %v459_v31 = vmax.f32 %v411_v27, 0.0  ;;  %v473_v35 = vpack.c.bf16 %v461_v28, %v460_v32  ;;  %v432_v39 = vadd.f32 %v894_v29, %v762_v6 }
 0x225   :  { %v423_v33 = vpop.f32.mrf.mxu1 }
 0x226   :  { %v472_v34 = vpack.c.bf16 %v459_v31, %v458_v30  ;;  %v424_v37 = vadd.f32 %v762_v6, %v423_v33  ;;  %v464_v46 = vmax.f32 %v432_v39, 0.0 }
 0x227   :  { %v895_v36 = vpop.f32.mrf.mxu1 }
 0x228   :  { %v435_v38 = vadd.f32 %v895_v36, %v762_v6  ;;  %920 = vmatprep.mubr.bf16.mxu0 %v472_v34  ;;  %v462_v44 = vmax.f32 %v424_v37, 0.0 }
 0x229   :  { %v426_v40 = vpop.f32.mrf.mxu1  ;;  %921 = vmatmul.mubr.bf16.gmra.mxu0 %v473_v35 }
 0x22a   :  { %v427_v41 = vadd.f32 %v762_v6, %v426_v40  ;;  %v465_v42 = vmax.f32 %v435_v38, 0.0 }
 0x22b   :  { %v898_v43 = vpop.f32.mrf.mxu1 }
 0x22c   :  { %v463_v45 = vmax.f32 %v427_v41, 0.0  ;;  %v475_v49 = vpack.c.bf16 %v465_v42, %v464_v46  ;;  %v448_v53 = vadd.f32 %v898_v43, %v762_v6 }
 0x22d   :  { %v439_v47 = vpop.f32.mrf.mxu1 }
 0x22e   :  { %v474_v48 = vpack.c.bf16 %v463_v45, %v462_v44  ;;  %v440_v51 = vadd.f32 %v762_v6, %v439_v47  ;;  %v468_v59 = vmax.f32 %v448_v53, 0.0 }
 0x22f   :  { %v899_v50 = vpop.f32.mrf.mxu1 }
 0x230   :  { %v451_v52 = vadd.f32 %v899_v50, %v762_v6  ;;  %924 = vmatprep.mubr.bf16.mxu0 %v474_v48  ;;  %v466_v57 = vmax.f32 %v440_v51, 0.0 }
 0x231   :  { %v442_v54 = vpop.f32.mrf.mxu1  ;;  %925 = vmatmul.mubr.bf16.gmra.mxu0 %v475_v49 }
 0x232   :  { %v443_v55 = vadd.f32 %v762_v6, %v442_v54  ;;  %v469_v56 = vmax.f32 %v451_v52, 0.0 }
 0x234   :  { %v467_v58 = vmax.f32 %v443_v55, 0.0  ;;  %v477_v61 = vpack.c.bf16 %v469_v56, %v468_v59 }
 0x236   :  { %v476_v60 = vpack.c.bf16 %v467_v58, %v466_v57 }
 0x238   :  { %928 = vmatprep.mubr.bf16.mxu0 %v476_v60 }
 0x239   :  { %929 = vmatmul.mubr.bf16.gmra.mxu0 %v477_v61 }
 0x2e1   :  { %v918_v62 = vpop.f32.mrf.mxu0 }
 0x2e3   :  { %v576_v2 = vpop.f32.mrf.mxu0 }
 0x2e5   :  { %v919_v0 = vpop.f32.mrf.mxu0 }
 0x2e6   :  { %v640_v23 = vpack.c.bf16 %v919_v0, %v918_v62 }
 0x2e7   :  { %v579_v3 = vpop.f32.mrf.mxu0 }
 0x2e8   :  { %v639_v24 = vpack.c.bf16 %v579_v3, %v576_v2 }
 0x2e9   :  { %v922_v4 = vpop.f32.mrf.mxu0 }
 0x2eb   :  { %v592_v5 = vpop.f32.mrf.mxu0 }
 0x2ed   :  { %v923_v7 = vpop.f32.mrf.mxu0 }
 0x2ee   :  { %v642_v20 = vpack.c.bf16 %v923_v7, %v922_v4 }
 0x2ef   :  { %v595_v8 = vpop.f32.mrf.mxu0 }
 0x2f0   :  { %v641_v21 = vpack.c.bf16 %v595_v8, %v592_v5 }
 0x2f1   :  { %v926_v9 = vpop.f32.mrf.mxu0 }
 0x2f3   :  { %v608_v10 = vpop.f32.mrf.mxu0 }
 0x2f5   :  { %v927_v11 = vpop.f32.mrf.mxu0 }
 0x2f6   :  { %v644_v18 = vpack.c.bf16 %v927_v11, %v926_v9 }
 0x2f7   :  { %v611_v6 = vpop.f32.mrf.mxu0 }
 0x2f8   :  { %v643_v19 = vpack.c.bf16 %v611_v6, %v608_v10 }
 0x2f9   :  { %v930_v12 = vpop.f32.mrf.mxu0 }
 0x2fb   :  { %v624_v13 = vpop.f32.mrf.mxu0 }
 0x2fd   :  { %v931_v14 = vpop.f32.mrf.mxu0 }
 0x2fe   :  { %v646_v15 = vpack.c.bf16 %v931_v14, %v930_v12 }
 0x2ff   :  { %v627_v16 = vpop.f32.mrf.mxu0 }
 0x300   :  { %v645_v17 = vpack.c.bf16 %v627_v16, %v624_v13  ;;  %932 = vmatprep.subr.bf16.mxu1 %v646_v15 }
 0x301   :  { %933 = vmatpush3.bf16.msra.mxu1 %v646_v15 }
 0x302   :  { %934 = vmatprep.subr.bf16.mxu1 %v645_v17 }
 0x305   :  { %935 = vmatpush3.bf16.msra.mxu1 %v645_v17 }
 0x306   :  { %936 = vmatprep.subr.bf16.mxu1 %v644_v18 }
 0x309   :  { %937 = vmatpush3.bf16.msra.mxu1 %v644_v18 }
 0x30a   :  { %938 = vmatprep.subr.bf16.mxu1 %v643_v19 }
 0x30d   :  { %939 = vmatpush3.bf16.msra.mxu1 %v643_v19 }
 0x30e   :  { %940 = vmatprep.subr.bf16.mxu1 %v642_v20 }
 0x311   :  { %941 = vmatpush3.bf16.msra.mxu1 %v642_v20 }
 0x312   :  { %942 = vmatprep.subr.bf16.mxu1 %v641_v21 }
 0x315   :  { %943 = vmatpush3.bf16.msra.mxu1 %v641_v21 }
 0x316   :  { %944 = vmatprep.subr.bf16.mxu1 %v640_v23 }
 0x319   :  { %945 = vmatpush3.bf16.msra.mxu1 %v640_v23 }
 0x31a   :  { %946 = vmatprep.subr.bf16.mxu1 %v639_v24 }
 0x31d   :  { %947 = vmatpush3.bf16.msra.mxu1 %v639_v24 }
 0x320   :  { %949 = vmatmul.mubr.bf16.vlgmr.msra.gmra.mxu1 %v1161_v63 }
 0x321   :  { %952 = vmatprep.mubr.bf16.mxu1 %v1164_v1 }
 0x328   :  { %953 = vmatmul.mubr.bf16.gmra.mxu1 %v1084_v22 }
 0x329   :  { %956 = vmatprep.mubr.bf16.mxu1 %v1084_v22 }
 0x330   :  { %957 = vmatmul.mubr.bf16.gmra.mxu1 %v1084_v22 }
 0x331   :  { %960 = vmatprep.mubr.bf16.mxu1 %v1084_v22 }
 0x338   :  { %961 = vmatmul.mubr.bf16.gmra.mxu1 %v1084_v22 }
 0x3e0   :  { %v950_v26 = vpop.f32.mrf.mxu1 }
 0x3e1   :  { %v697_v27 = vadd.f32 %v950_v26, %v771_v25 }
 0x3e2   :  { %v688_v63 = vpop.f32.mrf.mxu1 }
 0x3e3   :  { %743 = vst.msk [vmem:[%s1208_s6 + $0x10] sm:$0xff] %vm740_vm2, %v697_v27  ;;  %v689_v1 = vadd.f32 %v771_v25, %v688_v63 }
 0x3e4   :  { %v951_v28 = vpop.f32.mrf.mxu1 }
 0x3e5   :  { %741 = vst.msk [vmem:[%s1208_s6] sm:$0xff] %vm740_vm2, %v689_v1  ;;  %v700_v29 = vadd.f32 %v951_v28, %v771_v25 }
 0x3e6   :  { %v691_v22 = vpop.f32.mrf.mxu1 }
 0x3e7   :  { %744 = vst.msk [vmem:[%s1208_s6 + $0x18] sm:$0xff] %vm740_vm2, %v700_v29  ;;  %v692_v30 = vadd.f32 %v771_v25, %v691_v22 }
 0x3e8   :  { %v954_v31 = vpop.f32.mrf.mxu1 }
 0x3e9   :  { %742 = vst.msk [vmem:[%s1208_s6 + $0x8] sm:$0xff] %vm740_vm2, %v692_v30 }
 0x3ea   :  { %v704_v32 = vpop.f32.mrf.mxu1 }
 0x3eb   :  { %v705_v33 = vadd.f32 %v771_v25, %v704_v32 }
 0x3ec   :  { %v955_v34 = vpop.f32.mrf.mxu1 }
 0x3ed   :  { %746 = vst.msk [vmem:[%s1208_s6 + $0x20] sm:$0x3] %vm745_vm3, %v705_v33 }
 0x3ee   :  { %v707_v35 = vpop.f32.mrf.mxu1 }
 0x3f0   :  { %v958_v36 = vpop.f32.mrf.mxu1 }
 0x3f2   :  { %v717_v37 = vpop.f32.mrf.mxu1 }
 0x3f4   :  { %v959_v38 = vpop.f32.mrf.mxu1 }
 0x3f6   :  { %v719_v39 = vpop.f32.mrf.mxu1 }
 0x3f8   :  { %v962_v40 = vpop.f32.mrf.mxu1 }
 0x3fa   :  { %v729_v41 = vpop.f32.mrf.mxu1 }
 0x3fc   :  { %v963_v42 = vpop.f32.mrf.mxu1 }
 0x3fe   :  { %v731_v43 = vpop.f32.mrf.mxu1 }
 0x3ff   :  { %751 = vsyncpa [#allocation5], 1 }
 0x400   :  { %752 = vsyncpa [#allocation7], 1 }
 0x401   :  { %753 = vsyncpa [#allocation10], 1 }

</bundles_post_ra>
